<compile_context>
chip_gen: v7x
topology: tpu7x:2x2x1
jax: 0.10.0
libtpu: 0.0.40
codegen_flags: <defaults>
</compile_context>

<pallas_src>
import jax
import jax.numpy as jnp
from jax.experimental import pallas as pl
from jax.experimental.pallas import tpu as pltpu

EPS = 1e-05
_LANE = 128


def _round_up(x, m):
    return (x + m - 1) // m * m


def _cdiv(a, b):
    return (a + b - 1) // b


def _min_sublane(dtype):
    # 8 for 4-byte dtypes, 16 for bf16/fp16, 32 for int8/fp8 (sublane packing).
    return max(8, 32 // jnp.dtype(dtype).itemsize)


def _tpu_generation():
    try:
        kind = jax.devices()[0].device_kind.lower()
    except Exception:
        return None
    for g in ("v7", "v6", "v5"):
        if g in kind:
            return g
    return None


def _budgets():
    """Returns (per-input-block byte budget, scoped-VMEM limit, want >=2 row blocks)."""
    gen = _tpu_generation()
    if gen == "v7":
        # 3.2 TB/s HBM: bigger blocks amortize the ~0.35us/step overhead.
        # Only 64 MiB physical VMEM: 2 inputs x 2 buffers x 8 MiB = 32 MiB,
        # 48 MiB scoped limit leaves compiler headroom.  Also want both TCs.
        return 8 * 1024 * 1024, 48 * 1024 * 1024, True
    if gen == "v6":
        # 128 MiB physical VMEM: free headroom, marginal perf gain.
        return 8 * 1024 * 1024, 64 * 1024 * 1024, False
    # v5e / unknown: 4 MiB blocks already sit near the HBM roofline plateau;
    # just make sure we clear the 16 MiB default scoped-VMEM limit.
    return 4 * 1024 * 1024, 32 * 1024 * 1024, False


def _choose_tiles(R, HW, itemsize, sublane, per_block_budget, want_two_row_blocks):
    hw_full = _round_up(HW, _LANE)
    max_hw_tile = max(
        _LANE, (per_block_budget // (sublane * itemsize)) // _LANE * _LANE)
    hw_tile = min(hw_full, max_hw_tile, 32 * 1024)

    r_full = _round_up(R, sublane)
    max_row_tile = max(
        sublane, (per_block_budget // (hw_tile * itemsize)) // sublane * sublane)
    row_tile = min(r_full, max_row_tile, 1024)

    # v7x: only the "parallel" row axis is sharded across the 2 TensorCores.
    # Guarantee >= 2 row blocks whenever the row count allows it.
    if want_two_row_blocks and R > sublane and _cdiv(R, row_tile) < 2:
        half = _round_up(_cdiv(R, 2), sublane)
        row_tile = min(row_tile, max(sublane, half))

    return row_tile, hw_tile


def _make_ms_kernel(row_tile, hw_tile, HW):
    """Accumulate per-row intersection (m) and sum (s) over HW tiles.

    No wrapper-side padding: out-of-bounds lanes of the last HW block contain
    unspecified data and are masked here; out-of-bounds rows only ever affect
    their own (never-written-back) output rows.
    """
    hw_rem = HW % hw_tile  # static at trace time

    def kernel(o_ref, t_ref, m_ref, s_ref):
        j = pl.program_id(1)
        nj = pl.num_programs(1)

        @pl.when(j == 0)
        def _():
            m_ref[...] = jnp.zeros_like(m_ref)
            s_ref[...] = jnp.zeros_like(s_ref)

        o = o_ref[...].astype(jnp.float32)   # (row_tile, hw_tile)
        t = t_ref[...].astype(jnp.float32)
        prod = o * t
        ssum = o + t

        if hw_rem == 0:
            m_ref[...] += jnp.sum(prod, axis=-1, keepdims=True)
            s_ref[...] += jnp.sum(ssum, axis=-1, keepdims=True)
        else:
            # Full (interior) HW blocks: no mask needed.
            @pl.when(j < nj - 1)
            def _():
                m_ref[...] += jnp.sum(prod, axis=-1, keepdims=True)
                s_ref[...] += jnp.sum(ssum, axis=-1, keepdims=True)

            # Last HW block: mask the ragged lane tail (OOB data is garbage).
            @pl.when(j == nj - 1)
            def _():
                col = jax.lax.broadcasted_iota(
                    jnp.int32, (row_tile, hw_tile), 1)
                ok = col < hw_rem
                m_ref[...] += jnp.sum(jnp.where(ok, prod, 0.0),
                                      axis=-1, keepdims=True)
                s_ref[...] += jnp.sum(jnp.where(ok, ssum, 0.0),
                                      axis=-1, keepdims=True)

    return kernel


@jax.jit
def jaccard_criterion(output, target):
    """output, target: (N, C, H, W). Returns scalar float32 loss."""
    N, C, H, W = output.shape
    R, HW = N * C, H * W

    # Stream native dtype; cast to f32 happens inside the kernel only.
    o = output.reshape(R, HW)
    t = target.reshape(R, HW)

    o_bytes = jnp.dtype(o.dtype).itemsize
    t_bytes = jnp.dtype(t.dtype).itemsize
    itemsize = max(o_bytes, t_bytes)
    sublane = max(_min_sublane(o.dtype), _min_sublane(t.dtype))

    per_block_budget, vmem_limit, want_split = _budgets()
    row_tile, hw_tile = _choose_tiles(
        R, HW, itemsize, sublane, per_block_budget, want_split)

    grid = (_cdiv(R, row_tile), _cdiv(HW, hw_tile))

    cost = pl.CostEstimate(
        flops=4 * R * HW,                 # mul + 3 adds per element (m & s partials)
        transcendentals=0,
        bytes_accessed=R * HW * (o_bytes + t_bytes) + 8 * R,
    )

    m_out, s_out = pl.pallas_call(
        _make_ms_kernel(row_tile, hw_tile, HW),
        out_shape=(
            jax.ShapeDtypeStruct((R, 1), jnp.float32),
            jax.ShapeDtypeStruct((R, 1), jnp.float32),
        ),
        grid_spec=pltpu.PrefetchScalarGridSpec(
            num_scalar_prefetch=0,
            grid=grid,
            in_specs=[
                pl.BlockSpec((row_tile, hw_tile), lambda i, j: (i, j)),
                pl.BlockSpec((row_tile, hw_tile), lambda i, j: (i, j)),
            ],
            out_specs=[
                pl.BlockSpec((row_tile, 1), lambda i, j: (i, 0)),
                pl.BlockSpec((row_tile, 1), lambda i, j: (i, 0)),
            ],
        ),
        compiler_params=pltpu.CompilerParams(
            dimension_semantics=("parallel", "arbitrary"),
            vmem_limit_bytes=vmem_limit,
        ),
        cost_estimate=cost,
    )(o, t)

    # Tiny (N, C) epilogue in plain JAX (exactly matches the PyTorch reduction).
    m = m_out[:, 0].reshape(N, C)
    s = s_out[:, 0].reshape(N, C)
    loss = 1.0 - m / (s - m + EPS)
    return jnp.mean(jnp.mean(loss, axis=1))


def _jaccard_reference(output, target):
    o = output.astype(jnp.float32)
    t = target.astype(jnp.float32)
    m = jnp.sum(o * t, axis=(2, 3))
    s = jnp.sum(o + t, axis=(2, 3))
    loss = 1.0 - m / (s - m + EPS)
    return jnp.mean(jnp.mean(loss, axis=1))


if __name__ == "__main__":
    key = jax.random.PRNGKey(0)

    # Case 1: aligned shapes (N*C and H*W multiples of the tiling units).
    k1, k2, k3, k4 = jax.random.split(key, 4)
    N, C, H, W = 2, 4, 16, 16
    output = jax.nn.sigmoid(jax.random.normal(k1, (N, C, H, W), jnp.float32))
    target = (jax.random.uniform(k2, (N, C, H, W)) > 0.5).astype(jnp.float32)

    loss = jaccard_criterion(output, target)
    jax.block_until_ready(loss)
    ref = _jaccard_reference(output, target)
    assert jnp.allclose(loss, ref, rtol=1e-5, atol=1e-6), (loss, ref)

    # Case 2: ragged shapes (no wrapper padding -> in-kernel lane mask +
    # partial row block), exercising the new unpadded path.
    N2, C2, H2, W2 = 2, 3, 10, 10
    output2 = jax.nn.sigmoid(jax.random.normal(k3, (N2, C2, H2, W2), jnp.float32))
    target2 = (jax.random.uniform(k4, (N2, C2, H2, W2)) > 0.5).astype(jnp.float32)

    loss2 = jaccard_criterion(output2, target2)
    jax.block_until_ready(loss2)
    ref2 = _jaccard_reference(output2, target2)
    assert jnp.allclose(loss2, ref2, rtol=1e-5, atol=1e-6), (loss2, ref2)

    print("KERNEL_OK")
</pallas_src>

<mosaic_0001>
module attributes {stable_mosaic.version = 11 : i64} {
  func.func @kernel(%arg0: i32, %arg1: i32, %arg2: memref<8x256xf32, #tpu.memory_space<vmem>>, %arg3: memref<8x256xf32, #tpu.memory_space<vmem>>, %arg4: memref<8x1xf32, #tpu.memory_space<vmem>>, %arg5: memref<8x1xf32, #tpu.memory_space<vmem>>) attributes {dimension_semantics = [#tpu.dimension_semantics<parallel>, #tpu.dimension_semantics<arbitrary>], iteration_bounds = array<i64: 1, 1>, scalar_prefetch = 0 : i64, scratch_operands = 0 : i64, tpu.core_type = #tpu.core_type<tc>, window_params = [{transform_indices = @transform_0, window_bounds = array<i64: 8, 256>}, {transform_indices = @transform_1, window_bounds = array<i64: 8, 256>}, {transform_indices = @transform_2, window_bounds = array<i64: 8, 1>}, {transform_indices = @transform_3, window_bounds = array<i64: 8, 1>}]} {
    %c0_i32 = arith.constant 0 : i32
    %0 = arith.cmpi eq, %arg1, %c0_i32 : i32
    %1 = arith.extui %0 : i1 to i32
    %c0_i32_0 = arith.constant 0 : i32
    %2 = arith.cmpi ne, %1, %c0_i32_0 : i32
    scf.if %2 {
      %cst_13 = arith.constant 0.000000e+00 : f32
      %17 = vector.broadcast %cst_13 : f32 to vector<8x1xf32>
      %c0_14 = arith.constant 0 : index
      %c0_15 = arith.constant 0 : index
      %18 = vector.load %arg4[%c0_14, %c0_15] : memref<8x1xf32, #tpu.memory_space<vmem>>, vector<8x1xf32>
      tpu.vector_store %arg4[%c0_14, %c0_15], %17 {strides = array<i32>} : memref<8x1xf32, #tpu.memory_space<vmem>>, vector<8x1xf32>,
      %cst_16 = arith.constant 0.000000e+00 : f32
      %19 = vector.broadcast %cst_16 : f32 to vector<8x1xf32>
      %c0_17 = arith.constant 0 : index
      %c0_18 = arith.constant 0 : index
      %20 = vector.load %arg5[%c0_17, %c0_18] : memref<8x1xf32, #tpu.memory_space<vmem>>, vector<8x1xf32>
      tpu.vector_store %arg5[%c0_17, %c0_18], %19 {strides = array<i32>} : memref<8x1xf32, #tpu.memory_space<vmem>>, vector<8x1xf32>,
    } else {
    }
    %c0 = arith.constant 0 : index
    %c0_1 = arith.constant 0 : index
    %3 = vector.load %arg2[%c0, %c0_1] : memref<8x256xf32, #tpu.memory_space<vmem>>, vector<8x256xf32>
    %c0_2 = arith.constant 0 : index
    %c0_3 = arith.constant 0 : index
    %4 = vector.load %arg3[%c0_2, %c0_3] : memref<8x256xf32, #tpu.memory_space<vmem>>, vector<8x256xf32>
    %5 = arith.mulf %3, %4 : vector<8x256xf32>
    %6 = arith.addf %3, %4 : vector<8x256xf32>
    %c0_4 = arith.constant 0 : index
    %c0_5 = arith.constant 0 : index
    %7 = vector.load %arg4[%c0_4, %c0_5] : memref<8x1xf32, #tpu.memory_space<vmem>>, vector<8x1xf32>
    %cst = arith.constant dense<0.000000e+00> : vector<8xf32>
    %8 = vector.multi_reduction <add>, %5, %cst [1] : vector<8x256xf32> to vector<8xf32>
    %9 = vector.shape_cast %8 : vector<8xf32> to vector<8x1xf32>
    %10 = arith.addf %7, %9 : vector<8x1xf32>
    %c0_6 = arith.constant 0 : index
    %c0_7 = arith.constant 0 : index
    %11 = vector.load %arg4[%c0_6, %c0_7] : memref<8x1xf32, #tpu.memory_space<vmem>>, vector<8x1xf32>
    tpu.vector_store %arg4[%c0_6, %c0_7], %10 {strides = array<i32>} : memref<8x1xf32, #tpu.memory_space<vmem>>, vector<8x1xf32>,
    %c0_8 = arith.constant 0 : index
    %c0_9 = arith.constant 0 : index
    %12 = vector.load %arg5[%c0_8, %c0_9] : memref<8x1xf32, #tpu.memory_space<vmem>>, vector<8x1xf32>
    %cst_10 = arith.constant dense<0.000000e+00> : vector<8xf32>
    %13 = vector.multi_reduction <add>, %6, %cst_10 [1] : vector<8x256xf32> to vector<8xf32>
    %14 = vector.shape_cast %13 : vector<8xf32> to vector<8x1xf32>
    %15 = arith.addf %12, %14 : vector<8x1xf32>
    %c0_11 = arith.constant 0 : index
    %c0_12 = arith.constant 0 : index
    %16 = vector.load %arg5[%c0_11, %c0_12] : memref<8x1xf32, #tpu.memory_space<vmem>>, vector<8x1xf32>
    tpu.vector_store %arg5[%c0_11, %c0_12], %15 {strides = array<i32>} : memref<8x1xf32, #tpu.memory_space<vmem>>, vector<8x1xf32>,
    return
  }
  func.func @transform_0(%arg0: i32, %arg1: i32) -> (i32, i32) {
    %c0_i32 = arith.constant 0 : i32
    return %arg0, %arg1 : i32, i32
  }
  func.func @transform_1(%arg0: i32, %arg1: i32) -> (i32, i32) {
    %c0_i32 = arith.constant 0 : i32
    return %arg0, %arg1 : i32, i32
  }
  func.func @transform_2(%arg0: i32, %arg1: i32) -> (i32, i32) {
    %c0_i32 = arith.constant 0 : i32
    %c0_i32_0 = arith.constant 0 : i32
    return %arg0, %c0_i32 : i32, i32
  }
  func.func @transform_3(%arg0: i32, %arg1: i32) -> (i32, i32) {
    %c0_i32 = arith.constant 0 : i32
    %c0_i32_0 = arith.constant 0 : i32
    return %arg0, %c0_i32 : i32, i32
  }
}

</mosaic_0001>

<bundles_post_ra>
// kernel: squeeze.3
= control target key start
LH: loop header
LB: loop body
LE: loop exit
PB: predicated region body
PF: predicated region fallthrough
CT: control target
= control target key end

     0   :  { %vm7_vm0 = vcmask 31744   ;;  %s39_s0 = inlined_call_operand.vmem [shape: f32[8], index: 0, kind: input, shape index: {}]   ;;  %s40_s1 = inlined_call_operand.vmem [shape: f32[2,4], index: 1, kind: output, shape index: {}]  }
   0x1   :  { %v4_v0 = vld [vmem:[%s39_s0] sm:$0x1]  ;;  %s22_s0 = smov 124  }
   0x2   :  { %5 = vst [vmem:[#allocation1] sm:$0x1] %v4_v0 }
   0x9   :  { %v9_v1 = vld [vmem:[#allocation1] sm:$0x1]  }
   0xa   :  { %v6_v2 = vld [vmem:[#allocation1] sm:$0x1]   ;;  %10 = vrot.lane.b32.xlu0 %v9_v1, %s22_s0 }
   0xb   :  { %8 = vst.msk [vmem:[#allocation0] sm:$0x1] %vm7_vm0, %v6_v2  }
  0x7c   :  { %v11_v3 = vpop.permute.xlu0 %10  }
  0x7d   :  { %14 = vst.msk [vmem:[#allocation0 + $0x1] sm:$0x1] %vm7_vm0, %v11_v3  }
  0x84   :  { %v18_v4 = vld [vmem:[#allocation0] sm:$0x3] }
  0x85   :  { %20 = vst [vmem:[%s40_s1] sm:$0x3] %v18_v4 }

// kernel: jaccard_criterion.1
= control target key start
LH: loop header
LB: loop body
LE: loop exit
PB: predicated region body
PF: predicated region fallthrough
CT: control target
= control target key end

     0   :  { %vm17_vm0 = vcmask 7168   ;;  %v50_v3 = vmov 0.0   ;;  %s105_s0 = inlined_call_operand.vmem [shape: f32[8,256], index: 0, kind: input, shape index: {}]   ;;  %s106_s1 = inlined_call_operand.vmem [shape: f32[8,256], index: 1, kind: input, shape index: {}]   ;;  %s107_s2 = inlined_call_operand.vmem [shape: f32[8,1], index: 2, kind: output, shape index: {0}]   ;;  %s108_s3 = inlined_call_operand.vmem [shape: f32[8,1], index: 3, kind: output, shape index: {1}]  }
   0x1   :  { %v20_v0 = vld [vmem:[%s105_s0] sm:$0xff]  ;;  %v21_v1 = vld [vmem:[%s105_s0 + $0x8] sm:$0xff]  ;;  %18 = vst.msk [vmem:[%s107_s2] sm:$0xff] %vm17_vm0, %v50_v3  ;;  %19 = vst.msk [vmem:[%s108_s3] sm:$0xff] %vm17_vm0, %v50_v3 }
   0x2   :  { %v22_v2 = vld [vmem:[%s106_s1] sm:$0xff]  ;;  %v23_v4 = vld [vmem:[%s106_s1 + $0x8] sm:$0xff] }
   0x3   :  { %v24_v5 = vmul.f32 %v22_v2, %v20_v0  ;;  %v25_v6 = vmul.f32 %v23_v4, %v21_v1  ;;  %v26_v7 = vadd.f32 %v22_v2, %v20_v0  ;;  %v27_v8 = vadd.f32 %v23_v4, %v21_v1 }
   0x5   :  { %v29_v9 = vadd.f32 %v25_v6, %v24_v5  ;;  %v36_v10 = vadd.f32 %v27_v8, %v26_v7 }
   0x7   :  { %30 = vadd.xlane.f32.xlu0 %v29_v9 }
   0x8   :  { %v28_v11 = vld [vmem:[%s107_s2] sm:$0xff] }
   0x9   :  { %v35_v14 = vld [vmem:[%s108_s3] sm:$0xff] }
   0xb   :  { %37 = vadd.xlane.f32.xlu0 %v36_v10 }
  0x94   :  { %v31_v12 = vpop.xlane.xlu0 %30 }
  0x95   :  { %v32_v13 = vadd.f32 %v31_v12, %v28_v11 }
  0x97   :  { %34 = vst.msk [vmem:[%s107_s2] sm:$0xff] %vm17_vm0, %v32_v13 }
  0x98   :  { %v38_v15 = vpop.xlane.xlu0 %37 }
  0x99   :  { %v39_v16 = vadd.f32 %v38_v15, %v35_v14 }
  0x9b   :  { %40 = vst.msk [vmem:[%s108_s3] sm:$0xff] %vm17_vm0, %v39_v16 }

</bundles_post_ra>
